<compile_context>
chip_gen: v5e
topology: v5e:2x2
jax: 0.10.0
libtpu: 0.0.40
codegen_flags: <defaults>
</compile_context>

<pallas_src>
import functools

import jax
import jax.numpy as jnp
from jax import lax
from jax.experimental import pallas as pl
from jax.experimental.pallas import tpu as pltpu

# ----------------------------- config (DVGMambaConfig, small synthetic values) ----
HIDDEN     = 32
N_LAYER    = 2
ACTION_DIM = 4
N_ACTION   = 4            # n_action_to_predict
LOSS_COEF  = 1.0          # loss_coef_action
D_STATE    = 16
D_CONV     = 4
EXPAND     = 2
D_INNER    = EXPAND * HIDDEN                    # 64
DT_RANK    = max(1, HIDDEN // 16)               # 2
D_INTER    = ((HIDDEN * 2 + 127) // 128) * 128  # GatedMLP rounds hidden*2 up to mult. of 128
PATCH      = 8
LN_EPS     = 1e-5
DTYPE      = jnp.float32

_VMEM = functools.partial(pl.BlockSpec, memory_space=pltpu.MemorySpace.VMEM)

_WEIGHT_KEYS = (
    'ln1_g', 'ln1_b', 'in_proj_w', 'conv_w', 'conv_b', 'xproj_w',
    'dtproj_w', 'dtproj_b', 'A_T', 'Dv', 'out_proj_w',
    'ln2_g', 'ln2_b', 'fc1_w', 'fc2_w',
    'lnf_g', 'lnf_b', 'pa_w', 'pa_b',
)


# ----------------------------------- in-kernel helpers -----------------------------
def _sigmoid(x):
    # 1 / (1 + exp(-x)) : exp + approx reciprocal both land on the EUP slot.
    return pl.reciprocal(1.0 + jnp.exp(-x), approx=True)


def _layernorm(x, g, b):
    mu = jnp.mean(x, axis=-1, keepdims=True)
    var = jnp.mean(jnp.square(x - mu), axis=-1, keepdims=True)
    return (x - mu) * lax.rsqrt(var + LN_EPS) * g + b


# ----------------------------------- Pallas kernels -------------------------------
def _embed_kernel(x_ref, w_ref, b_ref, o_ref):
    # patchify Conv2d (kernel=stride=PATCH) expressed as a matmul over flattened patches
    acc = jnp.dot(x_ref[...], w_ref[...], preferred_element_type=jnp.float32)
    o_ref[...] = (acc + b_ref[...]).astype(o_ref.dtype)


def _backbone_kernel(seq, with_loss, emb_ref,
                     ln1_g, ln1_b, in_proj_w, conv_w, conv_b, xproj_w,
                     dtproj_w, dtproj_b, A_T, Dv, out_proj_w,
                     ln2_g, ln2_b, fc1_w, fc2_w, lnf_g, lnf_b, pa_w, pa_b,
                     *rest):
    if with_loss:
        labels_ref, preds_ref, loss_ref = rest
    else:
        (preds_ref,) = rest

    hidden = emb_ref[...].astype(jnp.float32)            # (seq, HIDDEN)
    residual = jnp.zeros_like(hidden)                    # residual_in_fp32

    row_ids = lax.broadcasted_iota(jnp.int32, (seq, D_INNER), 0)
    srow = lax.broadcasted_iota(jnp.int32, (seq, seq), 0)
    scol = lax.broadcasted_iota(jnp.int32, (seq, seq), 1)

    for l in range(N_LAYER):
        # ------------------ add + LayerNorm -> Mamba mixer ------------------
        residual = residual + hidden
        xn = _layernorm(residual, ln1_g[l], ln1_b[l])

        xz = jnp.dot(xn, in_proj_w[l], preferred_element_type=jnp.float32)  # (seq, 2*D_INNER)
        xi = xz[:, :D_INNER]
        z = xz[:, D_INNER:]

        # depthwise causal conv1d (kernel=D_CONV, groups=D_INNER) + SiLU.
        # Left zero-padding handled in-kernel via tiny causal shift matrices on the MXU.
        cw = conv_w[l]                                   # (D_CONV, D_INNER)
        acc = xi * cw[D_CONV - 1:D_CONV, :]              # tap with zero shift
        for k in range(D_CONV - 1):
            s = D_CONV - 1 - k
            shift = (srow - scol == s).astype(jnp.float32)          # rows t pick x[t-s]
            acc = acc + jnp.dot(shift, xi,
                                preferred_element_type=jnp.float32) * cw[k:k + 1, :]
        acc = acc + conv_b[l]
        xc = acc * _sigmoid(acc)                         # SiLU

        # fused x_proj: columns [B(16) | C(16) | dt(2)]
        bcd = jnp.dot(xc, xproj_w[l], preferred_element_type=jnp.float32)
        Bm = bcd[:, :D_STATE]                            # (seq, S)
        Cm = bcd[:, D_STATE:2 * D_STATE]                 # (seq, S)
        dt_lr = bcd[:, 2 * D_STATE:]                     # (seq, DT_RANK)
        dt_raw = jnp.dot(dt_lr, dtproj_w[l],
                         preferred_element_type=jnp.float32) + dtproj_b[l]

        # --- selective scan: hoist all elementwise-over-L work out of the recurrence ---
        dt = jnp.where(dt_raw > 20.0, dt_raw,
                       jnp.log(1.0 + jnp.exp(jnp.minimum(dt_raw, 20.0))))   # softplus
        u = dt * xc                                      # (seq, D_INNER)
        A = A_T[l]                                       # (S, D_INNER)
        BT = Bm.T                                        # (S, seq)
        CT = Cm.T                                        # (S, seq)

        h = jnp.zeros((D_STATE, D_INNER), jnp.float32)
        y = Dv[l] * xc                                   # D skip connection
        for t in range(seq):                             # static unroll; only h-update is serial
            dA_t = jnp.exp(dt[t:t + 1, :] * A)                        # (S, D) — off critical path
            h = dA_t * h + BT[:, t:t + 1] * u[t:t + 1, :]             # (S, D) — critical path
            y_t = jnp.sum(h * CT[:, t:t + 1], axis=0, keepdims=True)  # (1, D)
            y = y + jnp.where(row_ids == t, y_t, 0.0)

        y = y * (z * _sigmoid(z))                        # gate with SiLU(z)
        hidden = jnp.dot(y, out_proj_w[l], preferred_element_type=jnp.float32)  # (seq, HIDDEN)

        # ------------------ add + LayerNorm -> GatedMLP ----------------------
        residual = residual + hidden
        xn2 = _layernorm(residual, ln2_g[l], ln2_b[l])
        y12 = jnp.dot(xn2, fc1_w[l], preferred_element_type=jnp.float32)   # (seq, 2*D_INTER)
        y1 = y12[:, :D_INTER]
        gate = y12[:, D_INTER:]
        hidden = jnp.dot(y1 * (gate * _sigmoid(gate)), fc2_w[l],
                         preferred_element_type=jnp.float32)               # (seq, HIDDEN)

    # final fused add + LayerNorm
    residual = residual + hidden
    out = _layernorm(residual, lnf_g[...], lnf_b[...])

    # predict_action on the last N_ACTION tokens
    preds = jnp.dot(out[seq - N_ACTION:, :], pa_w[...],
                    preferred_element_type=jnp.float32) + pa_b[...]
    preds_ref[...] = preds.astype(preds_ref.dtype)

    if with_loss:
        diff = jnp.abs(preds - labels_ref[...].astype(jnp.float32))
        loss_ref[...] = jnp.mean(diff, keepdims=True) * LOSS_COEF


# ----------------------------------- wrappers ---------------------------------------
def frame_tokenizer(images, params):
    # TODO(synk): FrameTokenizer internals are not in the reference; implemented as a
    # patchify Conv2d (kernel=stride=PATCH) token embedding over each frame.
    B, L, C, H, W = images.shape
    P = PATCH
    x = images.reshape(B * L, C, H // P, P, W // P, P)
    x = jnp.transpose(x, (0, 2, 4, 1, 3, 5)).reshape(B * L * (H // P) * (W // P), C * P * P)
    tok = pl.pallas_call(
        _embed_kernel,
        out_shape=jax.ShapeDtypeStruct((x.shape[0], HIDDEN), DTYPE),
        in_specs=[_VMEM()] * 3,
        out_specs=_VMEM(),
    )(x.astype(DTYPE), params['patch_w'], params['patch_b'])
    return tok.reshape(B, L * (H // P) * (W // P), HIDDEN)


def backbone_forward(emb2d, params, labels=None):
    seq = emb2d.shape[0]
    with_loss = labels is not None
    kernel = functools.partial(_backbone_kernel, seq, with_loss)
    inputs = [emb2d.astype(DTYPE)] + [params[k] for k in _WEIGHT_KEYS]
    if with_loss:
        inputs.append(labels.astype(DTYPE))
        out_shape = (jax.ShapeDtypeStruct((N_ACTION, ACTION_DIM), DTYPE),
                     jax.ShapeDtypeStruct((1, 1), jnp.float32))
        out_specs = (_VMEM(), _VMEM())
    else:
        out_shape = jax.ShapeDtypeStruct((N_ACTION, ACTION_DIM), DTYPE)
        out_specs = _VMEM()
    return pl.pallas_call(
        kernel,
        out_shape=out_shape,
        in_specs=[_VMEM()] * len(inputs),
        out_specs=out_specs,
    )(*inputs)


def dvg_mamba_forward(params, images, states=None, actions=None,
                      action_labels=None, cache=None, training=True):
    images = images.astype(DTYPE)
    assert images.shape[0] == 1, "synthetic kernel supports batch=1 (eval branch hard-codes b=1)"
    emb = frame_tokenizer(images, params)                       # (1, seq_new, HIDDEN)

    if training:
        seq = emb.shape[1]
        labels_last = action_labels[:, -1, :, :].astype(DTYPE).reshape(N_ACTION, ACTION_DIM)
        preds, loss = backbone_forward(emb.reshape(seq, HIDDEN), params, labels_last)
        action_preds = preds.reshape(1, 1, N_ACTION, ACTION_DIM)   # .unsqueeze(0)
        return {'loss': loss[0, 0], 'action_preds': action_preds, 'cache': None}
    else:
        all_emb = jnp.concatenate([cache, emb], axis=1) if cache is not None else emb
        seq = all_emb.shape[1]
        preds = backbone_forward(all_emb.reshape(seq, HIDDEN), params)
        action_preds = preds.reshape(1, N_ACTION, ACTION_DIM)
        return {'loss': None,
                'action_preds': action_preds.reshape(1, 1, N_ACTION, ACTION_DIM),  # .unsqueeze(1)
                'cache': all_emb}


# ----------------------------------- params ------------------------------------------
def init_params(key):
    ks = iter(jax.random.split(key, 64))

    def nrm(shape, scale=0.02):
        return (scale * jax.random.normal(next(ks), shape)).astype(DTYPE)

    def stack(fn):
        return jnp.stack([fn() for _ in range(N_LAYER)], axis=0)

    # Mamba S4D-real init: A[d, s] = s + 1, A = -exp(A_log); stored transposed (S, d_inner)
    A_T = -jnp.tile(jnp.arange(1, D_STATE + 1, dtype=jnp.float32)[:, None], (1, D_INNER))

    return {
        'patch_w': nrm((3 * PATCH * PATCH, HIDDEN)),
        'patch_b': jnp.zeros((1, HIDDEN), DTYPE),
        'pa_w': nrm((HIDDEN, ACTION_DIM)),
        'pa_b': jnp.zeros((1, ACTION_DIM), DTYPE),
        'lnf_g': jnp.ones((1, HIDDEN), DTYPE),
        'lnf_b': jnp.zeros((1, HIDDEN), DTYPE),
        'ln1_g': jnp.ones((N_LAYER, 1, HIDDEN), DTYPE),
        'ln1_b': jnp.zeros((N_LAYER, 1, HIDDEN), DTYPE),
        'ln2_g': jnp.ones((N_LAYER, 1, HIDDEN), DTYPE),
        'ln2_b': jnp.zeros((N_LAYER, 1, HIDDEN), DTYPE),
        'in_proj_w': stack(lambda: nrm((HIDDEN, 2 * D_INNER))),
        'conv_w': stack(lambda: nrm((D_CONV, D_INNER), 0.1)),
        'conv_b': jnp.zeros((N_LAYER, 1, D_INNER), DTYPE),
        # fused x_proj weight, column layout [B | C | dt]
        'xproj_w': stack(lambda: jnp.concatenate(
            [nrm((D_INNER, D_STATE)), nrm((D_INNER, D_STATE)), nrm((D_INNER, DT_RANK))],
            axis=1)),
        'dtproj_w': stack(lambda: nrm((DT_RANK, D_INNER), 0.5)),
        'dtproj_b': jnp.full((N_LAYER, 1, D_INNER), -4.0, DTYPE),   # softplus^-1(~0.018)
        'A_T': jnp.tile(A_T[None].astype(DTYPE), (N_LAYER, 1, 1)),
        'Dv': jnp.ones((N_LAYER, 1, D_INNER), DTYPE),
        'out_proj_w': stack(lambda: nrm((D_INNER, HIDDEN))),
        'fc1_w': stack(lambda: nrm((HIDDEN, 2 * D_INTER))),
        'fc2_w': stack(lambda: nrm((D_INTER, HIDDEN))),
    }


# ----------------------------------------- main -------------------------------------
if __name__ == "__main__":
    key = jax.random.PRNGKey(0)
    kp, ki, kl = jax.random.split(key, 3)
    params = init_params(kp)

    # images: [batch=1, padded_length=2, 3, 16, 16] (NCHW per frame, PyTorch convention)
    images = jax.random.normal(ki, (1, 2, 3, 16, 16), dtype=jnp.float32)
    action_labels = jax.random.normal(kl, (1, 2, N_ACTION, ACTION_DIM), dtype=jnp.float32)

    # training branch (nn.Module default training=True): loss + action_preds
    out_train = dvg_mamba_forward(params, images, action_labels=action_labels, training=True)
    jax.block_until_ready((out_train['loss'], out_train['action_preds']))

    # eval branch (cache=None): action_preds + cache
    out_eval = dvg_mamba_forward(params, images, training=False)
    jax.block_until_ready((out_eval['action_preds'], out_eval['cache']))

    print("KERNEL_OK")
</pallas_src>

<mosaic_0001>
module attributes {stable_mosaic.version = 11 : i64} {
  func.func @_embed_kernel(%arg0: memref<8x192xf32, #tpu.memory_space<vmem>>, %arg1: memref<192x32xf32, #tpu.memory_space<vmem>>, %arg2: memref<1x32xf32, #tpu.memory_space<vmem>>, %arg3: memref<8x32xf32, #tpu.memory_space<vmem>>) attributes {dimension_semantics = [], scalar_prefetch = 0 : i64, scratch_operands = 0 : i64, tpu.core_type = #tpu.core_type<tc>} {
    %c0 = arith.constant 0 : index
    %c0_0 = arith.constant 0 : index
    %0 = vector.load %arg0[%c0, %c0_0] : memref<8x192xf32, #tpu.memory_space<vmem>>, vector<8x192xf32>
    %c0_1 = arith.constant 0 : index
    %c0_2 = arith.constant 0 : index
    %1 = vector.load %arg1[%c0_1, %c0_2] : memref<192x32xf32, #tpu.memory_space<vmem>>, vector<192x32xf32>
    %cst = arith.constant dense<0.000000e+00> : vector<8x32xf32>
    %2 = tpu.matmul %0, %1, %cst {dimension_numbers = #tpu.dot_dimension_numbers<[1], [0], [0], [1], [0, 0, 1, 1], [], []>} : vector<8x192xf32>, vector<192x32xf32>, vector<8x32xf32> -> vector<8x32xf32>
    %c0_3 = arith.constant 0 : index
    %c0_4 = arith.constant 0 : index
    %3 = vector.load %arg2[%c0_3, %c0_4] : memref<1x32xf32, #tpu.memory_space<vmem>>, vector<1x32xf32>
    %4 = vector.broadcast %3 : vector<1x32xf32> to vector<8x32xf32>
    %5 = arith.addf %2, %4 : vector<8x32xf32>
    %c0_5 = arith.constant 0 : index
    %c0_6 = arith.constant 0 : index
    %6 = vector.load %arg3[%c0_5, %c0_6] : memref<8x32xf32, #tpu.memory_space<vmem>>, vector<8x32xf32>
    tpu.vector_store %arg3[%c0_5, %c0_6], %5 {strides = array<i32>} : memref<8x32xf32, #tpu.memory_space<vmem>>, vector<8x32xf32>,
    return
  }
}

</mosaic_0001>

<bundles_post_ra>
// kernel: tpu_custom_call.1
= control target key start
LH: loop header
LB: loop body
LE: loop exit
PB: predicated region body
PF: predicated region fallthrough
CT: control target
= control target key end

     0   :  { %s241_s0 = inlined_call_operand.vmem [shape: f32[8,192], index: 0, kind: input, shape index: {}]   ;;  %s242_s1 = inlined_call_operand.vmem [shape: f32[192,32], index: 1, kind: input, shape index: {}]   ;;  %s243_s2 = inlined_call_operand.vmem [shape: f32[1,32], index: 2, kind: input, shape index: {}]   ;;  %s244_s3 = inlined_call_operand.hbm [shape: f32[8,32], index: 3, kind: output, shape index: {}]  }
   0x1   :  { %v32_v0 = vld [vmem:[%s242_s1 + $0x78] sm:$0xff]  ;;  %v31_v1 = vld [vmem:[%s242_s1 + $0x70] sm:$0xff]  ;;  %v30_v2 = vld [vmem:[%s242_s1 + $0x68] sm:$0xff] }
   0x2   :  { %49 = vmatpush.msra.mxu0 %v32_v0  ;;  %v40_v3 = vld [vmem:[%s242_s1 + $0xb8] sm:$0xff]  ;;  %v29_v4 = vld [vmem:[%s242_s1 + $0x60] sm:$0xff]  ;;  %v39_v5 = vld [vmem:[%s242_s1 + $0xb0] sm:$0xff] }
   0x3   :  { %77 = vmatpush.msra.mxu1 %v40_v3  ;;  %v38_v6 = vld [vmem:[%s242_s1 + $0xa8] sm:$0xff]  ;;  %v28_v7 = vld [vmem:[%s242_s1 + $0x58] sm:$0xff]  ;;  %v37_v8 = vld [vmem:[%s242_s1 + $0xa0] sm:$0xff] }
   0x4   :  { %50 = vmatpush.msra.mxu0 %v31_v1  ;;  %v27_v9 = vld [vmem:[%s242_s1 + $0x50] sm:$0xff]  ;;  %v36_v10 = vld [vmem:[%s242_s1 + $0x98] sm:$0xff] }
   0x5   :  { %78 = vmatpush.msra.mxu1 %v39_v5 }
   0x6   :  { %51 = vmatpush.msra.mxu0 %v30_v2 }
   0x7   :  { %79 = vmatpush.msra.mxu1 %v38_v6 }
   0x8   :  { %52 = vmatpush.msra.mxu0 %v29_v4 }
   0xa   :  { %53 = vmatpush.msra.mxu0 %v28_v7 }
   0xb   :  { %8 = vsyncpa [#allocation3], 0  ;;  %v26_v11 = vld [vmem:[%s242_s1 + $0x48] sm:$0xff]  ;;  %80 = vmatpush.msra.mxu1 %v37_v8  ;;  %v35_v12 = vld [vmem:[%s242_s1 + $0x90] sm:$0xff]  ;;  %vm45_vm0 = vcmask 523264   ;;  %s136_s12 = smov [#allocation2]  }
   0xc   :  { %54 = vmatpush.msra.mxu0 %v27_v9  ;;  %v25_v13 = vld [vmem:[%s242_s1 + $0x40] sm:$0xff]  ;;  %v34_v14 = vld [vmem:[%s242_s1 + $0x88] sm:$0xff]  ;;  %v24_v15 = vld [vmem:[%s242_s1 + $0x38] sm:$0xff]  ;;  %s96_s13 = sshll.u32 %s136_s12, 4  ;;  %s98_s16 = sshll.u32 %s244_s3, 4  ;;  %vm89_vm1 = vcmask 261120   ;;  %s97_s13 = int_to_ptr.vmem [resolvable:$true] %s96_s13  ;;  %s99_s16 = int_to_ptr.hbm [resolvable:$true] %s98_s16 }
   0xd   :  { %81 = vmatpush.msra.mxu1 %v36_v10  ;;  %v33_v16 = vld [vmem:[%s242_s1 + $0x80] sm:$0xff]  ;;  %v23_v17 = vld [vmem:[%s242_s1 + $0x30] sm:$0xff]  ;;  %v16_v18 = vld [vmem:[%s241_s0 + $0x8] sm:$0xff] }
   0xe   :  { %55 = vmatpush.msra.mxu0 %v26_v11  ;;  %v22_v19 = vld [vmem:[%s242_s1 + $0x28] sm:$0xff]  ;;  %v21_v20 = vld [vmem:[%s242_s1 + $0x20] sm:$0xff]  ;;  %v20_v21 = vld [vmem:[%s242_s1 + $0x18] sm:$0xff] }
   0xf   :  { %82 = vmatpush.msra.mxu1 %v35_v12  ;;  %v19_v22 = vld [vmem:[%s242_s1 + $0x10] sm:$0xff]  ;;  %v18_v23 = vld [vmem:[%s242_s1 + $0x8] sm:$0xff]  ;;  %v17_v24 = vld [vmem:[%s242_s1] sm:$0xff] }
  0x10   :  { %56 = vmatpush.msra.mxu0 %v25_v13  ;;  %v15_v25 = vld [vmem:[%s241_s0] sm:$0xff] }
  0x11   :  { %83 = vmatpush.msra.mxu1 %v34_v14  ;;  %v109_v26 = vld [vmem:[%s243_s2] ss:$0 sm:$0xff] }
  0x12   :  { %57 = vmatpush.msra.mxu0 %v24_v15 }
  0x13   :  { %84 = vmatpush.msra.mxu1 %v33_v16 }
  0x14   :  { %58 = vmatpush.msra.mxu0 %v23_v17  ;;  %107 = vmatmul.msk.f32.vlgmr.msra.gmra.mxu1 %vm45_vm0, %v16_v18 }
  0x16   :  { %59 = vmatpush.msra.mxu0 %v22_v19 }
  0x18   :  { %60 = vmatpush.msra.mxu0 %v21_v20 }
  0x1a   :  { %61 = vmatpush.msra.mxu0 %v20_v21 }
  0x1c   :  { %62 = vmatpush.msra.mxu0 %v19_v22 }
  0x1e   :  { %63 = vmatpush.msra.mxu0 %v18_v23 }
  0x20   :  { %64 = vmatpush.msra.mxu0 %v17_v24 }
  0x21   :  { %65 = vmatmul.f32.vlgmr.msra.gmra.mxu0 %v15_v25 }
  0x91   :  { %v86_v28 = vpop.f32.mrf.mxu1 }
  0x9e   :  { %v66_v27 = vpop.f32.mrf.mxu0 }
  0x9f   :  { %v67_v29 = vadd.f32 %v109_v26, %v66_v27 }
  0xa1   :  { %v87_v30 = vadd.f32 %v86_v28, %v67_v29 }
  0xa3   :  { %90 = vst.msk [vmem:[#allocation2] sm:$0xff] %vm89_vm1, %v87_v30 }
  0xa4   :  { %101 = dma.vmem_to_hbm [thread:$0]  %s97_s13, 128, %s99_s16, [#allocation3]  }
  0xa5   :  { %134 = dma.done.wait [#allocation3], 128  }
  0xa6   :  { %135 = vsyncadd [#allocation3], 4294967168 }
  0xa7   :  { %106 = vsyncpa [#allocation3], 1 }

</bundles_post_ra>
